<compile_context>
chip_gen: v5e
topology: v5e:2x2
jax: 0.10.0
libtpu: 0.0.40
codegen_flags: <defaults>
</compile_context>

<pallas_src>
import functools

import jax
import jax.numpy as jnp
from jax.experimental import pallas as pl
from jax.experimental.pallas import tpu as pltpu


def _ca_pool_kernel(x_ref, w1_ref, b1_ref, w2_ref, b2_ref, y_ref, acc_ref,
                    *, inv_hw):
    """Pass 1: tiled global-average-pool + squeeze/excite gate.

    Grid = (B, T).  x_ref is one (C, tile_hw) spatial slab of batch element b
    (channels on sublanes, spatial on lanes).  The spatial sum is accumulated
    in acc_ref across the 'arbitrary' T axis; on the last tile the 1x1 ->
    ReLU -> 1x1 -> sigmoid gate is computed on VPU/XLU/EUP and written once.
    """
    t = pl.program_id(1)

    @pl.when(t == 0)
    def _():
        acc_ref[...] = jnp.zeros_like(acc_ref)

    # Partial spatial sum of this slab: lane reduction (XLU), (C, 1).
    acc_ref[...] += jnp.sum(x_ref[0], axis=-1, keepdims=True)

    @pl.when(t == pl.num_programs(1) - 1)
    def _():
        pooled = acc_ref[...] * inv_hw                       # (C, 1) mean
        # y1 = relu(W1 . pooled + b1), W1 stored transposed as (C, Cr):
        #   elementwise mul (lane-broadcast of pooled) + sublane reduction.
        y1 = jnp.maximum(
            jnp.sum(w1_ref[...] * pooled, axis=0, keepdims=True)
            + b1_ref[...], 0.0)                              # (1, Cr)
        # y2 = sigmoid(W2 . y1 + b2), W2 as (C, Cr):
        #   elementwise mul (sublane-broadcast of y1) + lane reduction.
        z = jnp.sum(w2_ref[...] * y1, axis=1, keepdims=True) + b2_ref[...]
        y_ref[0] = 1.0 / (1.0 + jnp.exp(-z))                 # (C, 1) gate
        # NOTE: this is a once-per-image (C, 1) store; the bulk lane-dense
        # stores are in the scale pass below.


def _ca_scale_kernel(x_ref, y_ref, out_ref):
    """Pass 2: out = x * gate (per-channel scale, broadcast over lanes)."""
    out_ref[0] = x_ref[0] * y_ref[0]                         # (C, tile) * (C, 1)


def ca_layer_forward(x, conv1_w, conv1_b, conv2_w, conv2_b, *, tile_hw=None):
    """CALayer forward.

    x:        (B, C, H, W)   NCHW, as in PyTorch.
    conv1_w:  (C//r, C, 1, 1), conv1_b: (C//r,)
    conv2_w:  (C, C//r, 1, 1), conv2_b: (C,)
    Returns (B, C, H, W) = x * sigmoid(conv2(relu(conv1(GAP(x))))).
    """
    B, C, H, W = x.shape
    HW = H * W
    Cr = conv1_w.shape[0]
    assert conv1_w.shape == (Cr, C, 1, 1) and conv2_w.shape == (C, Cr, 1, 1)

    # NCHW kept natively: flatten spatial (free, row-major) -> (B, C, HW),
    # channels on sublanes, spatial on lanes.
    xf = x.reshape(B, C, HW).astype(jnp.float32)

    # Lane-dense (C, Cr) weight tiles for the VPU/XLU squeeze-excite tail.
    w1t = jnp.transpose(conv1_w.reshape(Cr, C)).astype(jnp.float32)   # (C, Cr)
    b1r = conv1_b.reshape(1, Cr).astype(jnp.float32)                  # (1, Cr)
    w2m = conv2_w.reshape(C, Cr).astype(jnp.float32)                  # (C, Cr)
    b2r = conv2_b.reshape(C, 1).astype(jnp.float32)                   # (C, 1)

    # Spatial tile: multiple of 128 lanes (unmasked stores) that divides HW;
    # fall back to the full image.  For production sizes keep
    # 2 (dbl-buf) * 2 (in+out) * C * tile_hw * 4 B comfortably under the VMEM
    # budget (v7x: 64 MiB physical, 32 MiB default scoped limit).
    if tile_hw is None or HW % tile_hw != 0 or tile_hw % 128 != 0:
        tile_hw = HW
    T = HW // tile_hw

    const2 = lambda shape: pl.BlockSpec(shape, lambda b, t: (0, 0))

    # Pass 1: per-image channel-attention gate y of shape (B, C, 1).
    y = pl.pallas_call(
        functools.partial(_ca_pool_kernel, inv_hw=1.0 / float(HW)),
        out_shape=jax.ShapeDtypeStruct((B, C, 1), jnp.float32),
        grid=(B, T),
        in_specs=[
            pl.BlockSpec((1, C, tile_hw), lambda b, t: (b, 0, t)),
            const2(w1t.shape), const2(b1r.shape),
            const2(w2m.shape), const2(b2r.shape),
        ],
        out_specs=pl.BlockSpec((1, C, 1), lambda b, t: (b, 0, 0)),
        scratch_shapes=[pltpu.VMEM((C, 1), jnp.float32)],
        compiler_params=pltpu.CompilerParams(
            dimension_semantics=("parallel", "arbitrary")),
    )(xf, w1t, b1r, w2m, b2r)

    # Pass 2: lane-dense scale, fully parallel grid.
    out = pl.pallas_call(
        _ca_scale_kernel,
        out_shape=jax.ShapeDtypeStruct((B, C, HW), jnp.float32),
        grid=(B, T),
        in_specs=[
            pl.BlockSpec((1, C, tile_hw), lambda b, t: (b, 0, t)),
            pl.BlockSpec((1, C, 1), lambda b, t: (b, 0, 0)),
        ],
        out_specs=pl.BlockSpec((1, C, tile_hw), lambda b, t: (b, 0, t)),
        compiler_params=pltpu.CompilerParams(
            dimension_semantics=("parallel", "parallel")),
    )(xf, y)

    return out.reshape(B, C, H, W).astype(x.dtype)


def _reference(x, conv1_w, conv1_b, conv2_w, conv2_b):
    """Pure-JAX reference of the CALayer forward (f32)."""
    B, C, H, W = x.shape
    Cr = conv1_w.shape[0]
    pooled = jnp.mean(x, axis=(2, 3))                                  # (B, C)
    y = jnp.einsum('bc,oc->bo', pooled, conv1_w.reshape(Cr, C)) + conv1_b[None, :]
    y = jnp.maximum(y, 0.0)
    y = jnp.einsum('br,or->bo', y, conv2_w.reshape(C, Cr)) + conv2_b[None, :]
    y = jax.nn.sigmoid(y)
    return x * y[:, :, None, None]


if __name__ == "__main__":
    # Small shapes consistent with the module: reduction=16 requires C >= 16;
    # H*W = 256 is a multiple of 128 so spatial tiles stay lane-dense.
    B, C, H, W = 2, 64, 16, 16
    reduction = 16
    Cr = C // reduction                                                # 4

    key = jax.random.PRNGKey(0)
    ks = jax.random.split(key, 5)
    x = jax.random.normal(ks[0], (B, C, H, W), jnp.float32)
    conv1_w = jax.random.normal(ks[1], (Cr, C, 1, 1), jnp.float32) * 0.1
    conv1_b = jax.random.normal(ks[2], (Cr,), jnp.float32) * 0.1
    conv2_w = jax.random.normal(ks[3], (C, Cr, 1, 1), jnp.float32) * 0.1
    conv2_b = jax.random.normal(ks[4], (C,), jnp.float32) * 0.1

    # tile_hw=128 -> 2 spatial tiles per image, exercising the cross-tile
    # GAP accumulation + pl.when finalize path even at the demo size.
    out = ca_layer_forward(x, conv1_w, conv1_b, conv2_w, conv2_b, tile_hw=128)
    jax.block_until_ready(out)

    ref = _reference(x, conv1_w, conv1_b, conv2_w, conv2_b)
    assert out.shape == x.shape
    assert jnp.allclose(out, ref, rtol=1e-4, atol=1e-4), "CALayer output mismatch"
    print("KERNEL_OK")
</pallas_src>

<mosaic_0001>
module attributes {stable_mosaic.version = 11 : i64} {
  func.func @_ca_pool_kernel(%arg0: i32, %arg1: i32, %arg2: memref<1x64x128xf32, #tpu.memory_space<vmem>>, %arg3: memref<64x4xf32, #tpu.memory_space<vmem>>, %arg4: memref<1x4xf32, #tpu.memory_space<vmem>>, %arg5: memref<64x4xf32, #tpu.memory_space<vmem>>, %arg6: memref<64x1xf32, #tpu.memory_space<vmem>>, %arg7: memref<1x64x1xf32, #tpu.memory_space<vmem>>, %arg8: memref<64x1xf32, #tpu.memory_space<vmem>>) attributes {dimension_semantics = [#tpu.dimension_semantics<parallel>, #tpu.dimension_semantics<arbitrary>], iteration_bounds = array<i64: 2, 2>, scalar_prefetch = 0 : i64, scratch_operands = 1 : i64, tpu.core_type = #tpu.core_type<tc>, window_params = [{transform_indices = @transform_0, window_bounds = array<i64: 1, 64, 128>}, {pipeline_mode = #tpu.pipeline_mode<synchronous>, transform_indices = @transform_1, window_bounds = array<i64: 64, 4>}, {pipeline_mode = #tpu.pipeline_mode<synchronous>, transform_indices = @transform_2, window_bounds = array<i64: 1, 4>}, {pipeline_mode = #tpu.pipeline_mode<synchronous>, transform_indices = @transform_3, window_bounds = array<i64: 64, 4>}, {pipeline_mode = #tpu.pipeline_mode<synchronous>, transform_indices = @transform_4, window_bounds = array<i64: 64, 1>}, {transform_indices = @transform_5, window_bounds = array<i64: 1, 64, 1>}]} {
    %c0_i32 = arith.constant 0 : i32
    %0 = arith.cmpi eq, %arg1, %c0_i32 : i32
    %1 = arith.extui %0 : i1 to i32
    %c0_i32_0 = arith.constant 0 : i32
    %2 = arith.cmpi ne, %1, %c0_i32_0 : i32
    scf.if %2 {
      %cst_8 = arith.constant 0.000000e+00 : f32
      %13 = vector.broadcast %cst_8 : f32 to vector<64x1xf32>
      %c0_9 = arith.constant 0 : index
      %c0_10 = arith.constant 0 : index
      %14 = vector.load %arg8[%c0_9, %c0_10] : memref<64x1xf32, #tpu.memory_space<vmem>>, vector<64x1xf32>
      tpu.vector_store %arg8[%c0_9, %c0_10], %13 {strides = array<i32>} : memref<64x1xf32, #tpu.memory_space<vmem>>, vector<64x1xf32>,
    } else {
    }
    %c0 = arith.constant 0 : index
    %c0_1 = arith.constant 0 : index
    %3 = vector.load %arg8[%c0, %c0_1] : memref<64x1xf32, #tpu.memory_space<vmem>>, vector<64x1xf32>
    %c0_2 = arith.constant 0 : index
    %c0_3 = arith.constant 0 : index
    %c0_4 = arith.constant 0 : index
    %4 = vector.load %arg2[%c0_2, %c0_3, %c0_4] : memref<1x64x128xf32, #tpu.memory_space<vmem>>, vector<1x64x128xf32>
    %5 = vector.shape_cast %4 : vector<1x64x128xf32> to vector<64x128xf32>
    %cst = arith.constant dense<0.000000e+00> : vector<64xf32>
    %6 = vector.multi_reduction <add>, %5, %cst [1] : vector<64x128xf32> to vector<64xf32>
    %7 = vector.shape_cast %6 : vector<64xf32> to vector<64x1xf32>
    %8 = arith.addf %3, %7 : vector<64x1xf32>
    %c0_5 = arith.constant 0 : index
    %c0_6 = arith.constant 0 : index
    %9 = vector.load %arg8[%c0_5, %c0_6] : memref<64x1xf32, #tpu.memory_space<vmem>>, vector<64x1xf32>
    tpu.vector_store %arg8[%c0_5, %c0_6], %8 {strides = array<i32>} : memref<64x1xf32, #tpu.memory_space<vmem>>, vector<64x1xf32>,
    %c1_i32 = arith.constant 1 : i32
    %10 = arith.cmpi eq, %arg1, %c1_i32 : i32
    %11 = arith.extui %10 : i1 to i32
    %c0_i32_7 = arith.constant 0 : i32
    %12 = arith.cmpi ne, %11, %c0_i32_7 : i32
    scf.if %12 {
      %c0_8 = arith.constant 0 : index
      %c0_9 = arith.constant 0 : index
      %13 = vector.load %arg8[%c0_8, %c0_9] : memref<64x1xf32, #tpu.memory_space<vmem>>, vector<64x1xf32>
      %cst_10 = arith.constant 3.906250e-03 : f32
      %14 = vector.broadcast %cst_10 : f32 to vector<64x1xf32>
      %15 = arith.mulf %13, %14 : vector<64x1xf32>
      %c0_11 = arith.constant 0 : index
      %c0_12 = arith.constant 0 : index
      %16 = vector.load %arg3[%c0_11, %c0_12] : memref<64x4xf32, #tpu.memory_space<vmem>>, vector<64x4xf32>
      %17 = vector.broadcast %15 : vector<64x1xf32> to vector<64x4xf32>
      %18 = arith.mulf %16, %17 : vector<64x4xf32>
      %cst_13 = arith.constant dense<0.000000e+00> : vector<4xf32>
      %19 = vector.multi_reduction <add>, %18, %cst_13 [0] : vector<64x4xf32> to vector<4xf32>
      %20 = vector.shape_cast %19 : vector<4xf32> to vector<1x4xf32>
      %c0_14 = arith.constant 0 : index
      %c0_15 = arith.constant 0 : index
      %21 = vector.load %arg4[%c0_14, %c0_15] : memref<1x4xf32, #tpu.memory_space<vmem>>, vector<1x4xf32>
      %22 = arith.addf %20, %21 : vector<1x4xf32>
      %cst_16 = arith.constant 0.000000e+00 : f32
      %23 = vector.broadcast %cst_16 : f32 to vector<1x4xf32>
      %24 = arith.maximumf %22, %23 : vector<1x4xf32>
      %c0_17 = arith.constant 0 : index
      %c0_18 = arith.constant 0 : index
      %25 = vector.load %arg5[%c0_17, %c0_18] : memref<64x4xf32, #tpu.memory_space<vmem>>, vector<64x4xf32>
      %26 = vector.broadcast %24 : vector<1x4xf32> to vector<64x4xf32>
      %27 = arith.mulf %25, %26 : vector<64x4xf32>
      %cst_19 = arith.constant dense<0.000000e+00> : vector<64xf32>
      %28 = vector.multi_reduction <add>, %27, %cst_19 [1] : vector<64x4xf32> to vector<64xf32>
      %29 = vector.shape_cast %28 : vector<64xf32> to vector<64x1xf32>
      %c0_20 = arith.constant 0 : index
      %c0_21 = arith.constant 0 : index
      %30 = vector.load %arg6[%c0_20, %c0_21] : memref<64x1xf32, #tpu.memory_space<vmem>>, vector<64x1xf32>
      %31 = arith.addf %29, %30 : vector<64x1xf32>
      %cst_22 = arith.constant 0.000000e+00 : f32
      %32 = vector.broadcast %cst_22 : f32 to vector<64x1xf32>
      %33 = arith.subf %32, %31 : vector<64x1xf32>
      %34 = math.exp %33 : vector<64x1xf32>
      %cst_23 = arith.constant 1.000000e+00 : f32
      %35 = vector.broadcast %cst_23 : f32 to vector<64x1xf32>
      %36 = arith.addf %35, %34 : vector<64x1xf32>
      %cst_24 = arith.constant 1.000000e+00 : f32
      %37 = vector.broadcast %cst_24 : f32 to vector<64x1xf32>
      %38 = arith.divf %37, %36 : vector<64x1xf32>
      %c0_25 = arith.constant 0 : index
      %c0_26 = arith.constant 0 : index
      %c0_27 = arith.constant 0 : index
      %39 = vector.load %arg7[%c0_25, %c0_26, %c0_27] : memref<1x64x1xf32, #tpu.memory_space<vmem>>, vector<1x64x1xf32>
      %40 = vector.shape_cast %39 : vector<1x64x1xf32> to vector<64x1xf32>
      %41 = vector.shape_cast %38 : vector<64x1xf32> to vector<1x64x1xf32>
      tpu.vector_store %arg7[%c0_25, %c0_26, %c0_27], %41 {strides = array<i32>} : memref<1x64x1xf32, #tpu.memory_space<vmem>>, vector<1x64x1xf32>,
    } else {
    }
    return
  }
  func.func @transform_0(%arg0: i32, %arg1: i32) -> (i32, i32, i32) {
    %c0_i32 = arith.constant 0 : i32
    %c0_i32_0 = arith.constant 0 : i32
    return %arg0, %c0_i32, %arg1 : i32, i32, i32
  }
  func.func @transform_1(%arg0: i32, %arg1: i32) -> (i32, i32) {
    %c0_i32 = arith.constant 0 : i32
    %c0_i32_0 = arith.constant 0 : i32
    %c0_i32_1 = arith.constant 0 : i32
    return %c0_i32, %c0_i32_0 : i32, i32
  }
  func.func @transform_2(%arg0: i32, %arg1: i32) -> (i32, i32) {
    %c0_i32 = arith.constant 0 : i32
    %c0_i32_0 = arith.constant 0 : i32
    %c0_i32_1 = arith.constant 0 : i32
    return %c0_i32, %c0_i32_0 : i32, i32
  }
  func.func @transform_3(%arg0: i32, %arg1: i32) -> (i32, i32) {
    %c0_i32 = arith.constant 0 : i32
    %c0_i32_0 = arith.constant 0 : i32
    %c0_i32_1 = arith.constant 0 : i32
    return %c0_i32, %c0_i32_0 : i32, i32
  }
  func.func @transform_4(%arg0: i32, %arg1: i32) -> (i32, i32) {
    %c0_i32 = arith.constant 0 : i32
    %c0_i32_0 = arith.constant 0 : i32
    %c0_i32_1 = arith.constant 0 : i32
    return %c0_i32, %c0_i32_0 : i32, i32
  }
  func.func @transform_5(%arg0: i32, %arg1: i32) -> (i32, i32, i32) {
    %c0_i32 = arith.constant 0 : i32
    %c0_i32_0 = arith.constant 0 : i32
    %c0_i32_1 = arith.constant 0 : i32
    return %arg0, %c0_i32, %c0_i32_0 : i32, i32, i32
  }
}

</mosaic_0001>

<bundles_post_ra>
// kernel: tpu_custom_call.1
= control target key start
LH: loop header
LB: loop body
LE: loop exit
PB: predicated region body
PF: predicated region fallthrough
CT: control target
= control target key end

     0   :  { %10 = vsyncpa [#allocation4], 0  ;;  %s1279_s0 = inlined_call_operand.hbm [shape: f32[2,64,256], index: 0, kind: input, shape index: {}]   ;;  %s1280_s1 = inlined_call_operand.vmem [shape: f32[64,4], index: 1, kind: input, shape index: {}]   ;;  %s1281_s2 = inlined_call_operand.vmem [shape: f32[1,4], index: 2, kind: input, shape index: {}]   ;;  %s1282_s3 = inlined_call_operand.vmem [shape: f32[64,4], index: 3, kind: input, shape index: {}]   ;;  %s1283_s4 = inlined_call_operand.vmem [shape: f32[64,1], index: 4, kind: input, shape index: {}]   ;;  %s1284_s5 = inlined_call_operand.vmem [shape: f32[2,64,1], index: 5, kind: output, shape index: {}]  }
   0x1   :  { %12 = vsyncpa [#allocation4 + $0x1], 0  ;;  %s982_s18 = smov 0   ;;  %s984_s19 = smov 0  }
   0x2   :  { %s986_s20 = smov 0   ;;  %s988_s21 = smov 0  }
   0x3   :  { %s990_s22 = smov 0   ;;  %s992_s23 = smov 0  }
   0x4   :  { %s994_s24 = smov 0   ;;  %s996_s25 = smov 0  }
   0x5 LB: > { %s722_s26 = sadd.s32 4294967295, %s945_s25   ;;  %s27_s27 = sadd.s32 1, %s937_s23  ;;  %s945_s25 = sphi %s996_s25, %s18_s25   ;;  %s941_s24 = sphi %s994_s24, %s1305_s24   ;;  %s937_s23 = sphi %s992_s23, %s1304_s23   ;;  %s933_s22 = sphi %s990_s22, %s1303_s22   ;;  %s929_s21 = sphi %s988_s21, %s1302_s21   ;;  %s925_s20 = sphi %s986_s20, %s1301_s20   ;;  %s921_s19 = sphi %s984_s19, %s1300_s19   ;;  %s917_s18 = sphi %s982_s18, %s1299_s18  }
   0x6   : > { %p28_p0 = scmp.ge.s32.totalorder %s27_s27, 2  ;;  %s30_s28 = sadd.s32 1, %s941_s24 }
   0x7   : > { %s39_s29 = sadd.s32 1, %s925_s20  ;;  %p46_p1 = scmp.ne.s32.totalorder %s925_s20, %s921_s19 }
   0x8   : > { %s1307_s27 = smov (%p28_p0, %s27_s27), 0  ;;  %s1309_s28 = smov (!%p28_p0, %s30_s28), %s941_s24 }
   0x9   : > { %1287 = sst [smem:[#allocation6_spill]] %s1307_s27  ;;  %s35_s30 = ssub.s32 %s937_s23, %s1307_s27 }
   0xa   : > { %p47_p2 = scmp.eq.s32.totalorder %s945_s25, 0  ;;  %p32_p3 = scmp.ge.s32.totalorder %s1309_s28, 2 }
   0xb   : > { %p52_p4 = scmp.ne.s32.totalorder %s921_s19, %s917_s18  ;;  %p53_p6 = scmp.eq.s32.totalorder %s722_s26, 0 }
   0xc   : > { %p1033_p5 = por %p47_p2, %p46_p1  ;;  %s1311_s28 = smov (%p32_p3, %s1309_s28), 0 }
   0xd   : > { %1289 = sst [smem:[#allocation7_spill]] %s1311_s28  ;;  %p1039_p7 = por %p53_p6, %p52_p4 }
   0xe   : > { %s34_s8 = ssub.s32 %s941_s24, %s1311_s28  ;;  %p744_p8 = scmp.lt.s32.totalorder %s945_s25, 4 }
   0xf   : > { %s36_s9 = sor.u32 %s35_s30, %s34_s8  ;;  %s198_s10 = sand.u32 1, %s925_s20  }
  0x10   : > { %p37_p9 = scmp.eq.s32.totalorder %s36_s9, 0  ;;  %s726_s11 = sshll.u32 %s198_s10, 6 }
  0x11   : > { %s727_s12 = sshll.u32 %s941_s24, 4  ;;  %s202_s16 = scalar_lea.vmem [#allocation3], %s726_s11 }
  0x12   : > { %s1049_s13 = scalar_select %p37_p9, %s925_s20, %s39_s29  }
  0x13   : > { %s206_s14 = sadd.s32 %s937_s23, %s727_s12  ;;  %s211_s17 = sshll.u32 %s202_s16, 4  ;;  %s212_s17 = int_to_ptr.vmem [resolvable:$true] %s211_s17 }
  0x14   : > { %s728_s15 = sshll.u32 %s206_s14, 3  ;;  %p741_p10 = pnand %p744_p8, %p1033_p5 }
  0x15   : > { %s208_s27 = scalar_lea.hbm %s1279_s0, %s728_s15  ;;  %p729_p11 = scmp.ge.s32.totalorder %s945_s25, 1 }
  0x16   : > { %s209_s28 = sshll.u32 %s208_s27, 4  ;;  %s199_s30 = scalar_lea.sflag [#allocation4], %s198_s10  ;;  %s210_s28 = int_to_ptr.hbm [resolvable:$true] %s209_s28 }
  0x17   : > { %s947_s8 = smov 256   ;;  %s948_s29 = smov 128  }
  0x18   : > { %s949_s9 = smov 8   ;;  %p219_p12 = scmp.lt.s32.totalorder %s945_s25, 5 }
  0x19   : > { %743 = dma.hbm_to_vmem [thread:$0]  (!%p741_p10), %s210_s28, 1024, %s212_s17, %s199_s30, %s947_s8, %s948_s29, %s949_s9  }
  0x1a   : > { %p220_p13 = pnand %p729_p11, %p219_p12 }
  0x1b   : > { %s225_s11 = sand.u32 (!%p220_p13), 1, %s921_s19  }
  0x1c   : > { %223 = sbr.rel (%p220_p13) target bundleno = 528 (0x210), region = 40  ;;  %s730_s12 = sshll.u32 (!%p220_p13), %s225_s11, 6 }
  0x1d   : > { %s226_s14 = scalar_lea.sflag (!%p220_p13), [#allocation4], %s225_s11  ;;  %s1062_s15 = scalar_lea.vmem (!%p220_p13), [#allocation3], %s730_s12 }
  0x21   : > { %912 = dma.done.wait (%p1039_p7), %s226_s14, 1024  }
  0x22   : > { %914 = vsyncadd (%p1039_p7), %s226_s14, 4294966272  ;;  %p257_p0 = scmp.lt.s32.totalorder %s933_s22, 1  ;;  %p733_p1 = scmp.ne.s32.totalorder %s929_s21, 0 }
  0x24   : > { %s1313_s22 = smov (!%p257_p0, %s933_s22), 1  ;;  %265 = sbr.rel (%p733_p1) target bundleno = 50 (0x32), region = 48 }
  0x25   : > { %s737_s27 = sshll.u32 %s1313_s22, 6 }
  0x26   : > { %s1073_s10 = scalar_lea.vmem %s1284_s5, %s737_s27 }
  0x29   : > { %vm266_vm0 = vcmask 7168   ;;  %v950_v0 = vmov 0.0  }
  0x2a   : > { %267 = vst.msk [vmem:[#allocation2] sm:$0xff] %vm266_vm0, %v950_v0 }
  0x2b   : > { %268 = vst.msk [vmem:[#allocation2 + $0x8] sm:$0xff] %vm266_vm0, %v950_v0 }
  0x2c   : > { %269 = vst.msk [vmem:[#allocation2 + $0x10] sm:$0xff] %vm266_vm0, %v950_v0 }
  0x2d   : > { %270 = vst.msk [vmem:[#allocation2 + $0x18] sm:$0xff] %vm266_vm0, %v950_v0 }
  0x2e   : > { %271 = vst.msk [vmem:[#allocation2 + $0x20] sm:$0xff] %vm266_vm0, %v950_v0 }
  0x2f   : > { %272 = vst.msk [vmem:[#allocation2 + $0x28] sm:$0xff] %vm266_vm0, %v950_v0 }
  0x30   : > { %273 = vst.msk [vmem:[#allocation2 + $0x30] sm:$0xff] %vm266_vm0, %v950_v0 }
  0x31   : > { %274 = vst.msk [vmem:[#allocation2 + $0x38] sm:$0xff] %vm266_vm0, %v950_v0 }
  0x32 PF: > { %v285_v1 = vld [vmem:[%s1062_s15 + $0x10] sm:$0xff]  ;;  %v283_v2 = vld [vmem:[%s1062_s15] sm:$0xff]  ;;  %v286_v4 = vld [vmem:[%s1062_s15 + $0x18] sm:$0xff]  ;;  %vm315_vm1 = vcmask 7168   ;;  %p734_p2 = scmp.ne.s32.totalorder %s929_s21, 1 }
  0x33   : > { %v287_v3 = vld [vmem:[%s1062_s15 + $0x20] sm:$0xff]  ;;  %295 = vadd.xlane.f32.xlu1 %v285_v1  ;;  %291 = vadd.xlane.f32.xlu0 %v283_v2  ;;  %v284_v5 = vld [vmem:[%s1062_s15 + $0x8] sm:$0xff]  ;;  %v290_v7 = vld [vmem:[%s1062_s15 + $0x38] sm:$0xff] }
  0x34   : > { %299 = vadd.xlane.f32.xlu2 %v287_v3  ;;  %v288_v6 = vld [vmem:[%s1062_s15 + $0x28] sm:$0xff]  ;;  %v289_v8 = vld [vmem:[%s1062_s15 + $0x30] sm:$0xff]  ;;  %v275_v10 = vld [vmem:[#allocation2] sm:$0xff] }
  0x35   : > { %v277_v9 = vld [vmem:[#allocation2 + $0x10] sm:$0xff]  ;;  %v279_v11 = vld [vmem:[#allocation2 + $0x20] sm:$0xff]  ;;  %v278_v18 = vld [vmem:[#allocation2 + $0x18] sm:$0xff] }
  0x36   : > { %v276_v19 = vld [vmem:[#allocation2 + $0x8] sm:$0xff] }
  0x37   : > { %v280_v20 = vld [vmem:[#allocation2 + $0x28] sm:$0xff]  ;;  %v281_v28 = vld [vmem:[#allocation2 + $0x30] sm:$0xff] }
  0x38   : > { %v282_v27 = vld [vmem:[#allocation2 + $0x38] sm:$0xff] }
  0x3b   : > { %297 = vadd.xlane.f32.xlu1 %v286_v4  ;;  %293 = vadd.xlane.f32.xlu0 %v284_v5 }
  0x3c   : > { %301 = vadd.xlane.f32.xlu2 %v288_v6 }
  0x43   : > { %305 = vadd.xlane.f32.xlu1 %v290_v7  ;;  %303 = vadd.xlane.f32.xlu0 %v289_v8 }
  0xa6   : > { %v296_v12 = vpop.xlane.xlu1 %295  ;;  %v292_v13 = vpop.xlane.xlu0 %291 }
  0xa7   : > { %v309_v14 = vadd.f32 %v296_v12, %v277_v9  ;;  %v307_v15 = vadd.f32 %v292_v13, %v275_v10  ;;  %v300_v16 = vpop.xlane.xlu2 %299 }
  0xa8   : > { %v311_v17 = vadd.f32 %v300_v16, %v279_v11 }
  0xa9   : > { %318 = vst.msk [vmem:[#allocation2 + $0x10] sm:$0xff] %vm315_vm1, %v309_v14 }
  0xaa   : > { %316 = vst.msk [vmem:[#allocation2] sm:$0xff] %vm315_vm1, %v307_v15 }
  0xab   : > { %320 = vst.msk [vmem:[#allocation2 + $0x20] sm:$0xff] %vm315_vm1, %v311_v17 }
  0xae   : > { %v298_v21 = vpop.xlane.xlu1 %297  ;;  %v294_v22 = vpop.xlane.xlu0 %293 }
  0xaf   : > { %v310_v23 = vadd.f32 %v298_v21, %v278_v18  ;;  %v308_v24 = vadd.f32 %v294_v22, %v276_v19  ;;  %v302_v25 = vpop.xlane.xlu2 %301 }
  0xb0   : > { %v312_v26 = vadd.f32 %v302_v25, %v280_v20 }
  0xb1   : > { %319 = vst.msk [vmem:[#allocation2 + $0x18] sm:$0xff] %vm315_vm1, %v310_v23 }
  0xb2   : > { %317 = vst.msk [vmem:[#allocation2 + $0x8] sm:$0xff] %vm315_vm1, %v308_v24 }
  0xb3   : > { %321 = vst.msk [vmem:[#allocation2 + $0x28] sm:$0xff] %vm315_vm1, %v312_v26 }
  0xb6   : > { %v306_v29 = vpop.xlane.xlu1 %305  ;;  %v304_v30 = vpop.xlane.xlu0 %303  ;;  %327 = sbr.rel (%p734_p2) target bundleno = 528 (0x210), region = 52 }
  0xb7   : > { %v314_v31 = vadd.f32 %v306_v29, %v282_v27  ;;  %v313_v32 = vadd.f32 %v304_v30, %v281_v28 }
  0xb9   : > { %323 = vst.msk [vmem:[#allocation2 + $0x38] sm:$0xff] %vm315_vm1, %v314_v31 }
  0xba   : > { %322 = vst.msk [vmem:[#allocation2 + $0x30] sm:$0xff] %vm315_vm1, %v313_v32 }
  0xbb   : > { %v330_v33 = vld [vmem:[#allocation2 + $0x10] sm:$0xff]  ;;  %v328_v34 = vld [vmem:[#allocation2] sm:$0xff]  ;;  %v951_v35 = vmov 0   ;;  %v331_v40 = vld [vmem:[#allocation2 + $0x18] sm:$0xff]  ;;  %vm400_vm2 = vcmask 31744  }
  0xbc   : > { %815 = vset.pattern.permute.xlu1 %v951_v35  ;;  %814 = vset.pattern.permute.xlu0 %v951_v35  ;;  %v338_v36 = vmul.f32 0.00390625, %v330_v33  ;;  %v336_v37 = vmul.f32 0.00390625, %v328_v34  ;;  %v332_v38 = vld [vmem:[#allocation2 + $0x20] sm:$0xff]  ;;  %v329_v41 = vld [vmem:[#allocation2 + $0x8] sm:$0xff]  ;;  %v339_v43 = vmul.f32 0.00390625, %v331_v40  ;;  %v346_v54 = vld [vmem:[%s1280_s1 + $0x10] sm:$0xff] }
  0xbd   : > { %816 = vset.pattern.permute.xlu2 %v951_v35  ;;  %v340_v39 = vmul.f32 0.00390625, %v332_v38  ;;  %v333_v42 = vld [vmem:[#allocation2 + $0x28] sm:$0xff]  ;;  %v337_v44 = vmul.f32 0.00390625, %v329_v41  ;;  %v344_v53 = vld [vmem:[%s1280_s1] sm:$0xff]  ;;  %v347_v57 = vld [vmem:[%s1280_s1 + $0x18] sm:$0xff] }
  0xbe   : > { %364 = vperm.xlu1 %815, %v338_v36   ;;  %354 = vperm.xlu0 %814, %v336_v37   ;;  %v341_v45 = vmul.f32 0.00390625, %v333_v42  ;;  %v345_v55 = vld [vmem:[%s1280_s1 + $0x8] sm:$0xff]  ;;  %v348_v62 = vld [vmem:[%s1280_s1 + $0x20] sm:$0xff]  ;;  %v350_v8 = vld [vmem:[%s1280_s1 + $0x30] sm:$0xff] }
  0xbf   : > { %374 = vperm.xlu2 %816, %v340_v39   ;;  %v349_v2 = vld [vmem:[%s1280_s1 + $0x28] sm:$0xff]  ;;  %v351_v12 = vld [vmem:[%s1280_s1 + $0x38] sm:$0xff]  ;;  %v422_v30 = vld [vmem:[%s1281_s2] sm:$0x1] }
  0xc0   : > { %v335_v46 = vld [vmem:[#allocation2 + $0x38] sm:$0xff]  ;;  %v427_v34 = vld [vmem:[%s1282_s3 + $0x10] sm:$0xff]  ;;  %v426_v35 = vld [vmem:[%s1282_s3 + $0x8] sm:$0xff] }
  0xc1   : > { %v334_v47 = vld [vmem:[#allocation2 + $0x30] sm:$0xff]  ;;  %v343_v48 = vmul.f32 0.00390625, %v335_v46  ;;  %v425_v36 = vld [vmem:[%s1282_s3] sm:$0xff]  ;;  %v428_v46 = vld [vmem:[%s1282_s3 + $0x18] sm:$0xff] }
  0xc2   : > { %v342_v49 = vmul.f32 0.00390625, %v334_v47 }
  0xc6   : > { %369 = vperm.xlu1 %815, %v339_v43   ;;  %359 = vperm.xlu0 %814, %v337_v44   ;;  %v431_v44 = vld [vmem:[%s1282_s3 + $0x30] sm:$0xff] }
  0xc7   : > { %379 = vperm.xlu2 %816, %v341_v45   ;;  %v430_v45 = vld [vmem:[%s1282_s3 + $0x28] sm:$0xff] }
  0xce   : > { %389 = vperm.xlu1 %815, %v343_v48   ;;  %384 = vperm.xlu0 %814, %v342_v49  }
 0x119   : > { %v375_v52 = vpop.permute.xlu2 %374 }
 0x11a   : > { %v396_v5 = vmul.f32 %v375_v52, %v348_v62 }
 0x11c   : > { %v408_v15 = vsel %vm400_vm2, %v396_v5, 0.0 }
 0x121   : > { %v380_v3 = vpop.permute.xlu2 %379 }
 0x122   : > { %v397_v9 = vmul.f32 %v380_v3, %v349_v2 }
 0x124   : > { %v410_v18 = vsel %vm400_vm2, %v397_v9, 0.0 }
 0x130   : > { %v365_v50 = vpop.permute.xlu1 %364  ;;  %v355_v51 = vpop.permute.xlu0 %354 }
 0x131   : > { %v392_v56 = vmul.f32 %v355_v51, %v344_v53  ;;  %v394_v60 = vmul.f32 %v365_v50, %v346_v54  ;;  %v429_v53 = vld [vmem:[%s1282_s3 + $0x20] sm:$0xff] }
 0x133   : > { %v401_v63 = vsel %vm400_vm2, %v392_v56, 0.0  ;;  %v404_v6 = vsel %vm400_vm2, %v394_v60, 0.0  ;;  %v432_v56 = vld [vmem:[%s1282_s3 + $0x38] sm:$0xff]  ;;  %v467_v60 = vld [vmem:[%s1283_s4 + $0x8] sm:$0xff] }
 0x138   : > { %v370_v58 = vpop.permute.xlu1 %369  ;;  %v360_v59 = vpop.permute.xlu0 %359 }
 0x139   : > { %v393_v61 = vmul.f32 %v360_v59, %v345_v55  ;;  %v395_v0 = vmul.f32 %v370_v58, %v347_v57  ;;  %v468_v59 = vld [vmem:[%s1283_s4 + $0x10] sm:$0xff] }
 0x13b   : > { %v402_v1 = vsel %vm400_vm2, %v393_v61, 0.0  ;;  %v406_v10 = vsel %vm400_vm2, %v395_v0, 0.0  ;;  %v466_v61 = vld [vmem:[%s1283_s4] sm:$0xff] }
 0x13c   : > { %v403_v4 = vadd.f32 %v402_v1, %v401_v63 }
 0x13e   : > { %v405_v7 = vadd.f32 %v404_v6, %v403_v4 }
 0x140   : > { %v407_v11 = vadd.f32 %v406_v10, %v405_v7  ;;  %v390_v13 = vpop.permute.xlu1 %389  ;;  %v385_v14 = vpop.permute.xlu0 %384  ;;  %v472_v10 = vld [vmem:[%s1283_s4 + $0x30] sm:$0xff] }
 0x141   : > { %v398_v16 = vmul.f32 %v385_v14, %v350_v8  ;;  %v399_v19 = vmul.f32 %v390_v13, %v351_v12  ;;  %v469_v12 = vld [vmem:[%s1283_s4 + $0x18] sm:$0xff] }
 0x142   : > { %v409_v17 = vadd.f32 %v408_v15, %v407_v11  ;;  %v471_v11 = vld [vmem:[%s1283_s4 + $0x28] sm:$0xff] }
 0x143   : > { %v412_v21 = vsel %vm400_vm2, %v398_v16, 0.0  ;;  %v414_v23 = vsel %vm400_vm2, %v399_v19, 0.0 }
 0x144   : > { %v411_v20 = vadd.f32 %v410_v18, %v409_v17 }
 0x146   : > { %v413_v22 = vadd.f32 %v412_v21, %v411_v20 }
 0x148   : > { %v415_v24 = vadd.f32 %v414_v23, %v413_v22 }
 0x14a   : > { %v416_v25 = vrot.slane %v415_v24, 4 }
 0x14c   : > { %v417_v26 = vadd.f32 %v416_v25, %v415_v24 }
 0x14e   : > { %v418_v27 = vrot.slane %v417_v26, 2 }
 0x150   : > { %v419_v28 = vadd.f32 %v418_v27, %v417_v26 }
 0x152   : > { %v420_v29 = vrot.slane %v419_v28, 1 }
 0x154   : > { %v421_v31 = vadd.f32 %v420_v29, %v419_v28 }
 0x156   : > { %v423_v32 = vadd.f32 %v422_v30, %v421_v31  ;;  %v470_v30 = vld [vmem:[%s1283_s4 + $0x20] sm:$0xff] }
 0x158   : > { %v424_v33 = vmax.f32 %v423_v32, 0.0 }
 0x15a   : > { %v433_v37 = vperm.slane %v424_v33, 0 }
 0x15c   : > { %v436_v38 = vmul.f32 %v433_v37, %v427_v34  ;;  %v435_v39 = vmul.f32 %v433_v37, %v426_v35  ;;  %v434_v40 = vmul.f32 %v433_v37, %v425_v36  ;;  %v440_v47 = vmul.f32 %v433_v37, %v431_v44 }
 0x15d   : > { %v439_v48 = vmul.f32 %v433_v37, %v430_v45  ;;  %v437_v49 = vmul.f32 %v433_v37, %v428_v46  ;;  %v438_v54 = vmul.f32 %v433_v37, %v429_v53  ;;  %v441_v57 = vmul.f32 %v433_v37, %v432_v56 }
 0x15e   : > { %v448_v41 = vsel %vm400_vm2, %v436_v38, 0.0  ;;  %v445_v42 = vsel %vm400_vm2, %v435_v39, 0.0  ;;  %v442_v43 = vsel %vm400_vm2, %v434_v40, 0.0  ;;  %v460_v50 = vsel %vm400_vm2, %v440_v47, 0.0 }
 0x15f   : > { %449 = vadd.xlane.f32.xlu1 %v448_v41  ;;  %446 = vadd.xlane.f32.xlu0 %v445_v42  ;;  %v457_v51 = vsel %vm400_vm2, %v439_v48, 0.0  ;;  %v451_v52 = vsel %vm400_vm2, %v437_v49, 0.0  ;;  %v454_v55 = vsel %vm400_vm2, %v438_v54, 0.0  ;;  %v463_v58 = vsel %vm400_vm2, %v441_v57, 0.0  ;;  %v473_v57 = vld [vmem:[%s1283_s4 + $0x38] sm:$0xff] }
 0x160   : > { %443 = vadd.xlane.f32.xlu2 %v442_v43 }
 0x167   : > { %461 = vadd.xlane.f32.xlu1 %v460_v50  ;;  %458 = vadd.xlane.f32.xlu0 %v457_v51 }
 0x168   : > { %452 = vadd.xlane.f32.xlu2 %v451_v52 }
 0x170   : > { %455 = vadd.xlane.f32.xlu2 %v454_v55 }
 0x178   : > { %464 = vadd.xlane.f32.xlu2 %v463_v58 }
 0x1d2   : > { %v450_v62 = vpop.xlane.xlu1 %449  ;;  %v447_v63 = vpop.xlane.xlu0 %446 }
 0x1d3   : > { %v476_v0 = vadd.f32 %v468_v59, %v450_v62  ;;  %v475_v1 = vadd.f32 %v467_v60, %v447_v63  ;;  %v444_v2 = vpop.xlane.xlu2 %443 }
 0x1d4   : > { %v474_v3 = vadd.f32 %v466_v61, %v444_v2 }
 0x1d5   : > { %v484_v4 = vsub.f32 0.0, %v476_v0  ;;  %v483_v5 = vsub.f32 0.0, %v475_v1 }
 0x1d6   : > { %v482_v6 = vsub.f32 0.0, %v474_v3 }
 0x1d7   : > { %v494_v7 = vmul.f32 1.442695, %v484_v4  ;;  %v492_v8 = vmul.f32 1.442695, %v483_v5 }
 0x1d8   : > { %v490_v9 = vmul.f32 1.442695, %v482_v6 }
 0x1d9   : > { %817 = vpow2.f32 %v494_v7 }
 0x1da   : > { %819 = vpow2.f32 %v492_v8  ;;  %v462_v13 = vpop.xlane.xlu1 %461  ;;  %v459_v14 = vpop.xlane.xlu0 %458 }
 0x1db   : > { %821 = vpow2.f32 %v490_v9  ;;  %v480_v15 = vadd.f32 %v472_v10, %v462_v13  ;;  %v479_v16 = vadd.f32 %v471_v11, %v459_v14  ;;  %v453_v17 = vpop.xlane.xlu2 %452 }
 0x1dc   : > { %v477_v18 = vadd.f32 %v469_v12, %v453_v17 }
 0x1dd   : > { %v488_v19 = vsub.f32 0.0, %v480_v15  ;;  %v487_v20 = vsub.f32 0.0, %v479_v16 }
 0x1de   : > { %v485_v21 = vsub.f32 0.0, %v477_v18 }
 0x1df   : > { %v818_v22 = vpop.eup %817  ;;  %v502_v23 = vmul.f32 1.442695, %v488_v19  ;;  %v500_v26 = vmul.f32 1.442695, %v487_v20 }
 0x1e0   : > { %v820_v24 = vpop.eup %819  ;;  %v508_v25 = vadd.f32 1.0, %v818_v22  ;;  %v496_v29 = vmul.f32 1.442695, %v485_v21 }
 0x1e1   : > { %v822_v27 = vpop.eup %821  ;;  %v507_v28 = vadd.f32 1.0, %v820_v24  ;;  %823 = vpow2.f32 %v502_v23 }
 0x1e2   : > { %825 = vrcp.f32 %v508_v25  ;;  %v1181_v32 = vadd.f32 1.0, %v822_v27  ;;  %v553_v37 = vand.u32 2147483647, %v508_v25  ;;  %v555_v41 = vand.u32 2147483648, %v508_v25 }
 0x1e3   : > { %827 = vrcp.f32 %v507_v28  ;;  %v456_v31 = vpop.xlane.xlu2 %455  ;;  %vm549_vm3 = vweird.f32 %v508_v25  ;;  %vm534_vm4 = vweird.f32 %v507_v28  ;;  %v538_v47 = vand.u32 2147483647, %v507_v28 }
 0x1e4   : > { %829 = vpow2.f32 %v500_v26  ;;  %v478_v33 = vadd.f32 %v470_v30, %v456_v31  ;;  %v540_v48 = vand.u32 2147483648, %v507_v28  ;;  %vm1189_vm5 = vcmp.eq.f32.partialorder %v553_v37, 8.507059e+37 }
 0x1e5   : > { %831 = vpow2.f32 %v496_v29  ;;  %v556_v55 = vor.u32 1.1754944e-38, %v555_v41  ;;  %v523_v60 = vand.u32 2147483647, %v1181_v32  ;;  %vm1201_vm8 = vcmp.eq.f32.partialorder %v538_v47, 8.507059e+37 }
 0x1e6   : > { %833 = vrcp.f32 %v1181_v32  ;;  %v486_v35 = vsub.f32 0.0, %v478_v33  ;;  %v541_v63 = vor.u32 1.1754944e-38, %v540_v48  ;;  %v525_v3 = vand.u32 2147483648, %v1181_v32 }
 0x1e7   : > { %v824_v34 = vpop.eup %823  ;;  %vm519_vm12 = vweird.f32 %v1181_v32  ;;  %vm1213_vm13 = vcmp.eq.f32.partialorder %v523_v60, 8.507059e+37 }
 0x1e8   : > { %v826_v36 = vpop.eup %825  ;;  %v1184_v38 = vadd.f32 1.0, %v824_v34  ;;  %v498_v42 = vmul.f32 1.442695, %v486_v35  ;;  %v526_v17 = vor.u32 1.1754944e-38, %v525_v3 }
 0x1e9   : > { %v828_v39 = vpop.eup %827  ;;  %v545_v40 = vmul.f32 %v826_v36, %v508_v25  ;;  %vm550_vm6 = vweird.f32 %v826_v36 }
 0x1ea   : > { %v830_v43 = vpop.eup %829  ;;  %v530_v44 = vmul.f32 %v828_v39, %v507_v28  ;;  %835 = vrcp.f32 %v1184_v38  ;;  %vm535_vm7 = vweird.f32 %v828_v39  ;;  %vm551_vm9 = vmor %vm549_vm3, %vm550_vm6  ;;  %v613_v15 = vand.u32 2147483647, %v1184_v38 }
 0x1eb   : > { %v832_v45 = vpop.eup %831  ;;  %v546_v46 = vsub.f32 1.0, %v545_v40  ;;  %v1187_v49 = vadd.f32 1.0, %v830_v43  ;;  %837 = vpow2.f32 %v498_v42  ;;  %v465_v58 = vpop.xlane.xlu2 %464  ;;  %vm536_vm10 = vmor %vm534_vm4, %vm535_vm7  ;;  %v615_v18 = vand.u32 2147483648, %v1184_v38 }
 0x1ec   : > { %v834_v50 = vpop.eup %833  ;;  %v531_v52 = vsub.f32 1.0, %v530_v44  ;;  %v1193_v53 = vadd.f32 1.0, %v832_v45  ;;  %v481_v4 = vadd.f32 %v473_v57, %v465_v58  ;;  %vm609_vm0 = vweird.f32 %v1184_v38 }
 0x1ed   : > { %v547_v54 = vmul.f32 %v826_v36, %v546_v46  ;;  %v515_v56 = vmul.f32 %v834_v50, %v1181_v32  ;;  %839 = vrcp.f32 %v1187_v49  ;;  %vm520_vm11 = vweird.f32 %v834_v50 }
 0x1ee   : > { %v532_v59 = vmul.f32 %v828_v39, %v531_v52  ;;  %841 = vrcp.f32 %v1193_v53  ;;  %vm521_vm14 = vmor %vm519_vm12, %vm520_vm11  ;;  %v489_v20 = vsub.f32 0.0, %v481_v4  ;;  %vm614_vm2 = vcmp.eq.f32.partialorder %v613_v15, 8.507059e+37 }
 0x1ef   : > { %v548_v61 = vadd.f32 %v826_v36, %v547_v54  ;;  %v516_v0 = vsub.f32 1.0, %v515_v56  ;;  %v616_v29 = vor.u32 1.1754944e-38, %v615_v18  ;;  %v598_v30 = vand.u32 2147483647, %v1187_v49 }
 0x1f0   : > { %v836_v1 = vpop.eup %835  ;;  %v533_v2 = vadd.f32 %v828_v39, %v532_v59  ;;  %v600_v31 = vand.u32 2147483648, %v1187_v49  ;;  %v504_v32 = vmul.f32 1.442695, %v489_v20  ;;  %v570_v37 = vand.u32 2147483648, %v1193_v53 }
 0x1f1   : > { %v552_v5 = vsel %vm551_vm9, %v826_v36, %v548_v61  ;;  %v517_v6 = vmul.f32 %v834_v50, %v516_v0  ;;  %v605_v7 = vmul.f32 %v836_v1, %v1184_v38  ;;  %v838_v8 = vpop.eup %837  ;;  %vm610_vm15 = vweird.f32 %v836_v1 }
 0x1f2   : > { %v557_v9 = vsel %vm1189_vm5, %v556_v55, %v552_v5  ;;  %v537_v10 = vsel %vm536_vm10, %v828_v39, %v533_v2  ;;  %v1225_v19 = vadd.f32 1.0, %v838_v8  ;;  %vm611_vm3 = vmor %vm609_vm0, %vm610_vm15  ;;  %vm594_vm5 = vweird.f32 %v1187_v49 }
 0x1f3   : > { %636 = vst.msk [vmem:[%s1073_s10 + $0x10] sm:$0xff] %vm315_vm1, %v557_v9  ;;  %v542_v12 = vsel %vm1201_vm8, %v541_v63, %v537_v10  ;;  %v518_v13 = vadd.f32 %v834_v50, %v517_v6  ;;  %v606_v14 = vsub.f32 1.0, %v605_v7  ;;  %v840_v16 = vpop.eup %839  ;;  %v568_v40 = vand.u32 2147483647, %v1193_v53 }
 0x1f4   : > { %635 = vst.msk [vmem:[%s1073_s10 + $0x8] sm:$0xff] %vm315_vm1, %v542_v12  ;;  %v590_v23 = vmul.f32 %v840_v16, %v1187_v49  ;;  %v842_v24 = vpop.eup %841  ;;  %843 = vrcp.f32 %v1225_v19  ;;  %vm595_vm4 = vweird.f32 %v840_v16  ;;  %v601_v42 = vor.u32 1.1754944e-38, %v600_v31 }
 0x1f5   : > { %v522_v21 = vsel %vm521_vm14, %v834_v50, %v518_v13  ;;  %v607_v22 = vmul.f32 %v836_v1, %v606_v14  ;;  %v560_v28 = vmul.f32 %v842_v24, %v1193_v53  ;;  %845 = vpow2.f32 %v504_v32  ;;  %vm596_vm7 = vmor %vm594_vm5, %vm595_vm4 }
 0x1f6   : > { %v527_v25 = vsel %vm1213_vm13, %v526_v17, %v522_v21  ;;  %v591_v27 = vsub.f32 1.0, %v590_v23  ;;  %vm565_vm6 = vweird.f32 %v842_v24  ;;  %vm564_vm8 = vweird.f32 %v1193_v53 }
 0x1f7   : > { %634 = vst.msk [vmem:[%s1073_s10] sm:$0xff] %vm315_vm1, %v527_v25  ;;  %v608_v26 = vadd.f32 %v836_v1, %v607_v22  ;;  %v561_v35 = vsub.f32 1.0, %v560_v28  ;;  %vm599_vm9 = vcmp.eq.f32.partialorder %v598_v30, 8.507059e+37  ;;  %vm566_vm10 = vmor %vm564_vm8, %vm565_vm6  ;;  %v571_v47 = vor.u32 1.1754944e-38, %v570_v37 }
 0x1f8   : > { %v592_v34 = vmul.f32 %v840_v16, %v591_v27  ;;  %vm569_vm11 = vcmp.eq.f32.partialorder %v568_v40, 8.507059e+37  ;;  %v585_v52 = vand.u32 2147483648, %v1225_v19  ;;  %v583_v54 = vand.u32 2147483647, %v1225_v19 }
 0x1f9   : > { %v612_v33 = vsel %vm611_vm3, %v836_v1, %v608_v26  ;;  %v562_v39 = vmul.f32 %v842_v24, %v561_v35  ;;  %vm579_vm13 = vweird.f32 %v1225_v19 }
 0x1fa   : > { %v617_v36 = vsel %vm614_vm2, %v616_v29, %v612_v33  ;;  %v593_v38 = vadd.f32 %v840_v16, %v592_v34  ;;  %v844_v41 = vpop.eup %843  ;;  %v586_v57 = vor.u32 1.1754944e-38, %v585_v52  ;;  %vm584_vm15 = vcmp.eq.f32.partialorder %v583_v54, 8.507059e+37 }
 0x1fb   : > { %640 = vst.msk [vmem:[%s1073_s10 + $0x30] sm:$0xff] %vm315_vm1, %v617_v36  ;;  %v563_v44 = vadd.f32 %v842_v24, %v562_v39  ;;  %v575_v45 = vmul.f32 %v844_v41, %v1225_v19  ;;  %v846_v50 = vpop.eup %845  ;;  %vm580_vm12 = vweird.f32 %v844_v41 }
 0x1fc   : > { %v597_v43 = vsel %vm596_vm7, %v840_v16, %v593_v38  ;;  %v513_v55 = vadd.f32 1.0, %v846_v50  ;;  %vm581_vm14 = vmor %vm579_vm13, %vm580_vm12 }
 0x1fd   : > { %v602_v46 = vsel %vm599_vm9, %v601_v42, %v597_v43  ;;  %v567_v48 = vsel %vm566_vm10, %v842_v24, %v563_v44  ;;  %v576_v49 = vsub.f32 1.0, %v575_v45 }
 0x1fe   : > { %639 = vst.msk [vmem:[%s1073_s10 + $0x28] sm:$0xff] %vm315_vm1, %v602_v46  ;;  %v572_v51 = vsel %vm569_vm11, %v571_v47, %v567_v48  ;;  %847 = vrcp.f32 %v513_v55  ;;  %v630_v63 = vand.u32 2147483648, %v513_v55  ;;  %v628_v1 = vand.u32 2147483647, %v513_v55 }
 0x1ff   : > { %637 = vst.msk [vmem:[%s1073_s10 + $0x18] sm:$0xff] %vm315_vm1, %v572_v51  ;;  %v577_v53 = vmul.f32 %v844_v41, %v576_v49  ;;  %vm624_vm2 = vweird.f32 %v513_v55 }
 0x200   : > { %v631_v3 = vor.u32 1.1754944e-38, %v630_v63  ;;  %vm629_vm4 = vcmp.eq.f32.partialorder %v628_v1, 8.507059e+37 }
 0x201   : > { %v578_v56 = vadd.f32 %v844_v41, %v577_v53 }
 0x203   : > { %v582_v58 = vsel %vm581_vm14, %v844_v41, %v578_v56 }
 0x204   : > { %v587_v59 = vsel %vm584_vm15, %v586_v57, %v582_v58  ;;  %v848_v60 = vpop.eup %847 }
 0x205   : > { %638 = vst.msk [vmem:[%s1073_s10 + $0x20] sm:$0xff] %vm315_vm1, %v587_v59  ;;  %v620_v61 = vmul.f32 %v848_v60, %v513_v55  ;;  %vm625_vm0 = vweird.f32 %v848_v60 }
 0x206   : > { %vm626_vm3 = vmor %vm624_vm2, %vm625_vm0 }
 0x207   : > { %v621_v62 = vsub.f32 1.0, %v620_v61 }
 0x209   : > { %v622_v0 = vmul.f32 %v848_v60, %v621_v62 }
 0x20b   : > { %v623_v2 = vadd.f32 %v848_v60, %v622_v0 }
 0x20d   : > { %v627_v4 = vsel %vm626_vm3, %v848_v60, %v623_v2 }
 0x20e   : > { %v632_v5 = vsel %vm629_vm4, %v631_v3, %v627_v4 }
 0x20f   : > { %641 = vst.msk [vmem:[%s1073_s10 + $0x38] sm:$0xff] %vm315_vm1, %v632_v5 }
 0x210 PF: > { %s18_s25 = sadd.s32 1, %s945_s25   ;;  %s1297_s15 = sld [smem:[#allocation6_spill]] }
 0x211   : > { %p15_p3 = scmp.ge.s32.totalorder %s18_s25, 6   ;;  %s1298_s27 = sld [smem:[#allocation7_spill]] }
 0x212   : > { %s1299_s18 = smov %s921_s19  ;;  %s1300_s19 = smov %s925_s20 }
 0x213   : > { %s1301_s20 = smov %s1049_s13  ;;  %s1302_s21 = smov %s937_s23 }
 0x214   : > { %s1303_s22 = smov %s941_s24  ;;  %17 = sbr.rel (!%p15_p3) target bundleno = 5 (0x5), region = 88 }
 0x216   : > { %s1304_s23 = smov %s1297_s15 }
 0x217   : > { %s1305_s24 = smov %s1298_s27 }
 0x219   :  { %663 = vsyncpa [#allocation4], 1 }
 0x21a   :  { %665 = vsyncpa [#allocation4 + $0x1], 1 }

</bundles_post_ra>
